<compile_context>
chip_gen: v7x
topology: tpu7x:2x2x1
jax: 0.10.0
libtpu: 0.0.40
codegen_flags: <defaults>
</compile_context>

<pallas_src>
import functools

import jax
import jax.numpy as jnp
import numpy as np
from jax.experimental import pallas as pl
from jax.experimental.pallas import tpu as pltpu


_TARGET_TILE_BYTES = 2 * 1024 * 1024   # aim for ~2 MiB per view tile (HBM roofline)
_MIN_ROW_STEPS = 8                      # keep >= 8 row blocks when B allows (v7x 2 TCs)
_FAST_PATH_ELEMENTS = 1 << 16           # below this, fused XLA elementwise wins


def _weighted_mean_kernel(w_ref, *refs, n_views):
    # w_ref : SMEM (V,) float32   -- softmax-normalized weights
    # refs  : n_views input VMEM tiles (bB, bD), then the output tile.
    x_refs = refs[:n_views]
    o_ref = refs[n_views]
    # Static unroll over the (small) view axis; the f32 scalar weight promotes
    # each product to f32, so accumulation stays in f32 without explicit casts.
    # TODO(synk): for very large n_views (>~16) switch to a fori_loop over a
    # stacked input to bound unrolled vreg live ranges.
    acc = w_ref[0] * x_refs[0][...]
    for v in range(1, n_views):
        acc = acc + w_ref[v] * x_refs[v][...]
    o_ref[...] = acc.astype(o_ref.dtype)


def _vmem_budget():
    """Returns (single-buffer-set budget bytes, vmem_limit_bytes) per TPU gen."""
    phys = None
    try:
        phys = getattr(pltpu.get_tpu_info(), "vmem_capacity_bytes", None)
    except Exception:
        phys = None
    if phys is not None and phys >= 100 * 1024 * 1024:
        # v5e / v6e: 128 MiB physical VMEM -> ~48 MiB double-buffered total.
        return 24 * 1024 * 1024, 64 * 1024 * 1024
    # v7x (64 MiB per TensorCore) or unknown: stay conservative so
    # double-buffering (~40 MiB total) still fits comfortably.
    return 20 * 1024 * 1024, 48 * 1024 * 1024


def weighted_mean(inputs, weights, *, force_pallas=False):
    """Pallas implementation of WeightedMean.forward.

    inputs : list of n_views arrays, each (B, D), same dtype
    weights: (n_views,) learnable weights (unnormalized)
    """
    n_views = len(inputs)
    assert n_views >= 1
    B, D = inputs[0].shape
    dtype = inputs[0].dtype
    for x in inputs:
        assert x.shape == (B, D), "all views must share the same shape"
        assert x.dtype == dtype, "all views must share the same dtype"
    assert weights.shape == (n_views,)

    # Softmax over the V scalar parameters (parameter glue in plain JAX, f32).
    w_norm = jax.nn.softmax(weights.astype(jnp.float32), axis=0)

    # Small-N fast path: launch + grid-step overhead dominates for tiny inputs.
    if not force_pallas and B * D < _FAST_PATH_ELEMENTS:
        acc = w_norm[0] * inputs[0]
        for v in range(1, n_views):
            acc = acc + w_norm[v] * inputs[v]
        return acc.astype(dtype)

    itemsize = jnp.dtype(dtype).itemsize
    pack = max(8, 32 // itemsize)          # packed sublane multiple: 8 f32 / 16 bf16 / 32 i8
    budget_bytes, vmem_limit_bytes = _vmem_budget()

    def rdown(x):
        return max(pack, (x // pack) * pack)

    def rup(x):
        return -(-x // pack) * pack

    # ---- feature-dim block: prefer full D (no reshape/copy); chunk only if a
    # ---- minimal-height tile set would already blow the VMEM budget.
    if (n_views + 1) * pack * D * itemsize <= budget_bytes:
        bD = D                                           # full dim is always legal
    else:
        bD = (budget_bytes // ((n_views + 1) * pack * itemsize)) // 128 * 128
        bD = int(max(128, min(bD, D)))
    d_grid = pl.cdiv(D, bD)

    # ---- row block: big enough for the byte target, small enough for the VMEM
    # ---- budget (double-buffered) and for >= _MIN_ROW_STEPS grid steps.
    row_set_bytes = (n_views + 1) * bD * itemsize        # one row across all streams
    vmem_rows = budget_bytes // row_set_bytes
    target_rows = _TARGET_TILE_BYTES // (bD * itemsize)
    steps_rows = -(-B // _MIN_ROW_STEPS)
    if B <= pack:
        bB = B                                           # whole (small) first dim
    else:
        bB = min(rdown(vmem_rows), rdown(target_rows), rup(steps_rows), B)
        bB = int(max(pack, bB))
    b_grid = pl.cdiv(B, bB)

    kernel = functools.partial(_weighted_mean_kernel, n_views=n_views)
    view_spec = pl.BlockSpec((bB, bD), lambda i, j: (i, j))

    out = pl.pallas_call(
        kernel,
        out_shape=jax.ShapeDtypeStruct((B, D), dtype),
        grid_spec=pltpu.PrefetchScalarGridSpec(
            num_scalar_prefetch=0,
            grid=(b_grid, d_grid),
            in_specs=[pl.BlockSpec(memory_space=pltpu.MemorySpace.SMEM)]
                     + [view_spec] * n_views,
            out_specs=pl.BlockSpec((bB, bD), lambda i, j: (i, j)),
        ),
        compiler_params=pltpu.CompilerParams(
            dimension_semantics=("parallel", "parallel"),
            vmem_limit_bytes=vmem_limit_bytes,
        ),
    )(w_norm, *inputs)
    return out


if __name__ == "__main__":
    key = jax.random.PRNGKey(0)

    def reference(inputs, weights):
        w = jax.nn.softmax(weights.astype(jnp.float32), axis=0)
        stacked = jnp.stack([x.astype(jnp.float32) for x in inputs], axis=-1)
        return jnp.sum(w[None, None, :] * stacked, axis=-1)

    cases = [
        # (n_views,   B,   D, dtype,        force_pallas, rtol, atol)
        (4,  16,  64, jnp.float32,  False, 1e-5, 1e-5),   # tiny -> fused fast path
        (4,  16,  64, jnp.float32,  True,  1e-5, 1e-5),   # same shape through the kernel
        (3, 100, 256, jnp.float32,  True,  1e-5, 1e-5),   # ragged last row block
        (4, 128, 640, jnp.float32,  False, 1e-5, 1e-5),   # multi-step grid, lane-dense D
        (5,  64, 256, jnp.bfloat16, True,  2e-2, 2e-2),   # packed dtype (pack=16), f32 accum
    ]

    for idx, (V, B, D, dtype, force, rtol, atol) in enumerate(cases):
        case_key = jax.random.fold_in(key, idx)
        xkeys = jax.random.split(case_key, V + 1)
        inputs = [
            jax.random.normal(xkeys[v], (B, D), dtype=jnp.float32).astype(dtype)
            for v in range(V)
        ]
        # Random (non-uniform) weights exercise the softmax; deterministic.
        weights = jax.random.normal(xkeys[V], (V,), dtype=jnp.float32)

        out = jax.block_until_ready(weighted_mean(inputs, weights, force_pallas=force))
        ref = reference(inputs, weights)
        np.testing.assert_allclose(
            np.asarray(out, dtype=np.float32),
            np.asarray(ref, dtype=np.float32),
            rtol=rtol, atol=atol,
        )

    print("KERNEL_OK")
</pallas_src>

<mosaic_0001>
module attributes {stable_mosaic.version = 11 : i64} {
  func.func @_weighted_mean_kernel(%arg0: i32, %arg1: i32, %arg2: memref<4xf32, #tpu.memory_space<smem>>, %arg3: memref<8x64xf32, #tpu.memory_space<vmem>>, %arg4: memref<8x64xf32, #tpu.memory_space<vmem>>, %arg5: memref<8x64xf32, #tpu.memory_space<vmem>>, %arg6: memref<8x64xf32, #tpu.memory_space<vmem>>, %arg7: memref<8x64xf32, #tpu.memory_space<vmem>>) attributes {dimension_semantics = [#tpu.dimension_semantics<parallel>, #tpu.dimension_semantics<parallel>], iteration_bounds = array<i64: 2, 1>, scalar_prefetch = 0 : i64, scratch_operands = 0 : i64, tpu.core_type = #tpu.core_type<tc>, window_params = [{transform_indices = @transform_0, window_bounds = array<i64: 4>}, {transform_indices = @transform_1, window_bounds = array<i64: 8, 64>}, {transform_indices = @transform_2, window_bounds = array<i64: 8, 64>}, {transform_indices = @transform_3, window_bounds = array<i64: 8, 64>}, {transform_indices = @transform_4, window_bounds = array<i64: 8, 64>}, {transform_indices = @transform_5, window_bounds = array<i64: 8, 64>}]} {
    %c0 = arith.constant 0 : index
    %0 = memref.load %arg2[%c0] : memref<4xf32, #tpu.memory_space<smem>>
    %c0_0 = arith.constant 0 : index
    %c0_1 = arith.constant 0 : index
    %1 = vector.load %arg3[%c0_0, %c0_1] : memref<8x64xf32, #tpu.memory_space<vmem>>, vector<8x64xf32>
    %2 = vector.broadcast %0 : f32 to vector<8x64xf32>
    %3 = arith.mulf %2, %1 : vector<8x64xf32>
    %c1 = arith.constant 1 : index
    %4 = memref.load %arg2[%c1] : memref<4xf32, #tpu.memory_space<smem>>
    %c0_2 = arith.constant 0 : index
    %c0_3 = arith.constant 0 : index
    %5 = vector.load %arg4[%c0_2, %c0_3] : memref<8x64xf32, #tpu.memory_space<vmem>>, vector<8x64xf32>
    %6 = vector.broadcast %4 : f32 to vector<8x64xf32>
    %7 = arith.mulf %6, %5 : vector<8x64xf32>
    %8 = arith.addf %3, %7 : vector<8x64xf32>
    %c2 = arith.constant 2 : index
    %9 = memref.load %arg2[%c2] : memref<4xf32, #tpu.memory_space<smem>>
    %c0_4 = arith.constant 0 : index
    %c0_5 = arith.constant 0 : index
    %10 = vector.load %arg5[%c0_4, %c0_5] : memref<8x64xf32, #tpu.memory_space<vmem>>, vector<8x64xf32>
    %11 = vector.broadcast %9 : f32 to vector<8x64xf32>
    %12 = arith.mulf %11, %10 : vector<8x64xf32>
    %13 = arith.addf %8, %12 : vector<8x64xf32>
    %c3 = arith.constant 3 : index
    %14 = memref.load %arg2[%c3] : memref<4xf32, #tpu.memory_space<smem>>
    %c0_6 = arith.constant 0 : index
    %c0_7 = arith.constant 0 : index
    %15 = vector.load %arg6[%c0_6, %c0_7] : memref<8x64xf32, #tpu.memory_space<vmem>>, vector<8x64xf32>
    %16 = vector.broadcast %14 : f32 to vector<8x64xf32>
    %17 = arith.mulf %16, %15 : vector<8x64xf32>
    %18 = arith.addf %13, %17 : vector<8x64xf32>
    %c0_8 = arith.constant 0 : index
    %c0_9 = arith.constant 0 : index
    %19 = vector.load %arg7[%c0_8, %c0_9] : memref<8x64xf32, #tpu.memory_space<vmem>>, vector<8x64xf32>
    tpu.vector_store %arg7[%c0_8, %c0_9], %18 {strides = array<i32>} : memref<8x64xf32, #tpu.memory_space<vmem>>, vector<8x64xf32>,
    return
  }
  func.func @transform_0(%arg0: i32, %arg1: i32) -> i32 {
    %c0_i32 = arith.constant 0 : i32
    %c0_i32_0 = arith.constant 0 : i32
    return %c0_i32 : i32
  }
  func.func @transform_1(%arg0: i32, %arg1: i32) -> (i32, i32) {
    %c0_i32 = arith.constant 0 : i32
    return %arg0, %arg1 : i32, i32
  }
  func.func @transform_2(%arg0: i32, %arg1: i32) -> (i32, i32) {
    %c0_i32 = arith.constant 0 : i32
    return %arg0, %arg1 : i32, i32
  }
  func.func @transform_3(%arg0: i32, %arg1: i32) -> (i32, i32) {
    %c0_i32 = arith.constant 0 : i32
    return %arg0, %arg1 : i32, i32
  }
  func.func @transform_4(%arg0: i32, %arg1: i32) -> (i32, i32) {
    %c0_i32 = arith.constant 0 : i32
    return %arg0, %arg1 : i32, i32
  }
  func.func @transform_5(%arg0: i32, %arg1: i32) -> (i32, i32) {
    %c0_i32 = arith.constant 0 : i32
    return %arg0, %arg1 : i32, i32
  }
}

</mosaic_0001>

<bundles_post_ra>
// kernel: tpu_custom_call.1
= control target key start
LH: loop header
LB: loop body
LE: loop exit
PB: predicated region body
PF: predicated region fallthrough
CT: control target
= control target key end

     0   :  { %s1284_s0 = inlined_call_operand.hbm [shape: f32[4], index: 0, kind: input, shape index: {}]   ;;  %s1285_s1 = inlined_call_operand.hbm [shape: f32[16,64], index: 1, kind: input, shape index: {}]   ;;  %s1286_s2 = inlined_call_operand.hbm [shape: f32[16,64], index: 2, kind: input, shape index: {}]   ;;  %s1287_s3 = inlined_call_operand.hbm [shape: f32[16,64], index: 3, kind: input, shape index: {}]   ;;  %s1288_s4 = inlined_call_operand.hbm [shape: f32[16,64], index: 4, kind: input, shape index: {}]   ;;  %s1289_s5 = inlined_call_operand.hbm [shape: f32[16,64], index: 5, kind: output, shape index: {}]  }
   0x1   :  { %1305 = sst [smem:[#allocation25_spill]] %s1285_s1 }
   0x2   :  { %1306 = sst [smem:[#allocation26_spill]] %s1286_s2 }
   0x3   :  { %10 = vsyncpa [#allocation5], 0 }
   0x4   :  { %11 = vsyncpa [#allocation3], 0 }
   0x5   :  { %13 = vsyncpa [#allocation3 + $0x1], 0 }
   0x6   :  { %14 = vsyncpa [#allocation8], 0 }
   0x7   :  { %16 = vsyncpa [#allocation8 + $0x1], 0 }
   0x8   :  { %17 = vsyncpa [#allocation11], 0 }
   0x9   :  { %19 = vsyncpa [#allocation11 + $0x1], 0 }
   0xa   :  { %20 = vsyncpa [#allocation4], 0 }
   0xb   :  { %22 = vsyncpa [#allocation4 + $0x1], 0  ;;  %s963_s18 = smov 0   ;;  %s965_s19 = smov 0  }
   0xc   :  { %s967_s20 = smov 0   ;;  %s969_s21 = smov 0  }
   0xd   :  { %s971_s22 = smov 0   ;;  %s973_s23 = smov 0  }
   0xe LB: > { %1307 = sst [smem:[#allocation18_spill]] %s905_s18  ;;  %s40_s24 = sadd.s32 1, %s921_s22  ;;  %s925_s23 = sphi %s973_s23, %s28_s23   ;;  %s921_s22 = sphi %s971_s22, %s1340_s22   ;;  %s917_s21 = sphi %s969_s21, %s1339_s21   ;;  %s913_s20 = sphi %s967_s20, %s1343_s20   ;;  %s909_s19 = sphi %s965_s19, %s1342_s19   ;;  %s905_s18 = sphi %s963_s18, %s1341_s18  }
   0xf   : > { %1308 = sst [smem:[#allocation19_spill]] %s913_s20  ;;  %s70_s25 = sadd.s32 1, %s913_s20 }
  0x10   : > { %1309 = sst [smem:[#allocation20_spill]] %s921_s22  ;;  %p42_p0 = scmp.ge.s32.totalorder %s40_s24, 2 }
  0x11   : > { %1310 = sst [smem:[#allocation21_spill]] %s925_s23  ;;  %p1290_p1 = scmp.ne.s32.totalorder %s913_s20, %s909_s19 }
  0x12   : > { %p78_p2 = scmp.eq.s32.totalorder %s925_s23, 0  ;;  %s1345_s24 = smov (%p42_p0, %s40_s24), 0 }
  0x13   : > { %1311 = sst [smem:[#allocation22_spill]] %s1345_s24  ;;  %p646_p5 = scmp.lt.s32.totalorder %s925_s23, 2 }
  0x14   : > { %p79_p4 = por %p78_p2, %p1290_p1  ;;  %s65_s26 = ssub.s32 %s921_s22, %s1345_s24 }
  0x15   : > { %s1008_s27 = sand.u32 1, %s913_s20   ;;  %p68_p6 = scmp.eq.s32.totalorder %s65_s26, 0 }
  0x16   : > { %s1011_s28 = sshll.u32 %s1008_s27, 3  ;;  %s1014_s29 = sshll.u32 %s921_s22, 7 }
  0x17   : > { %p1016_p7 = pnand %p646_p5, %p79_p4  ;;  %s247_s7 = sand.u32 1, %s925_s23  }
  0x18   : > { %s1021_s6 = scalar_select %p68_p6, %s913_s20, %s70_s25  }
  0x19   : > { %s1312_s30 = scalar_select %p1016_p7, 1, 0 }
  0x1a   : > { %1313 = sst [smem:[#allocation23_spill]] %s1021_s6  ;;  %s1314_s2 = sld [smem:[#allocation26_spill]] }
  0x1b   : > { %s251_s11 = scalar_lea.vmem [#allocation7], %s1011_s28  ;;  %s1033_s13 = scalar_lea.sflag [#allocation8], %s247_s7 }
  0x1c   : > { %s259_s12 = sshll.u32 %s251_s11, 4  ;;  %p1039_p9 = pneg %p1016_p7  ;;  %s1031_s12 = int_to_ptr.vmem [resolvable:$true] %s259_s12 }
  0x20   : > { %s1028_s10 = scalar_lea.hbm %s1314_s2, %s1014_s29  ;;  %s703_s25 = scalar_lea.hbm %s1314_s2, 256 }
  0x21   : > { %s698_s14 = scalar_lea.hbm %s1028_s10, 128  ;;  %p704_p12 = scmp.lt.u32.totalorder %s1028_s10, %s1314_s2 }
  0x22   : > { %p699_p8 = scmp.ne.s32.totalorder %s1028_s10, %s698_s14  ;;  %p705_p13 = scmp.lt.u32.totalorder %s703_s25, %s698_s14 }
  0x23   : > { %p707_p2 = scmp.lt.u32.totalorder %s698_s14, %s1028_s10 }
  0x24   : > { %p701_p10 = pnand %p1039_p9, %p699_p8  ;;  %p706_p0 = por %p705_p13, %p704_p12 }
  0x26   : > { %p702_p11 = pneg %p701_p10  ;;  %p708_p4 = por %p707_p2, %p706_p0 }
  0x28   : > { %p709_p5 = pnand %p708_p4, %p702_p11 }
  0x2a   : > { %712 = shalt.err (!%p709_p5)
}
  0x2b   : > { %s713_s7 = scalar_lea.vmem %s1031_s12, 128  ;;  %s927_s9 = smov [#allocation7]  }
  0x2c   : > { %p714_p6 = scmp.ne.s32.totalorder %s1031_s12, %s713_s7  ;;  %s718_s11 = sshll.u32 %s927_s9, 4  ;;  %s719_s11 = int_to_ptr.vmem [resolvable:$false] %s718_s11 }
  0x2d   : > { %s720_s16 = scalar_lea.vmem %s719_s11, 256  ;;  %p721_p3 = scmp.lt.s32.totalorder %s1031_s12, %s719_s11 }
  0x2e   : > { %p716_p8 = pnand %p714_p6, %p1039_p9  ;;  %p722_p1 = scmp.lt.s32.totalorder %s720_s16, %s713_s7 }
  0x30   : > { %p717_p10 = pneg %p716_p8  ;;  %p723_p12 = por %p722_p1, %p721_p3 }
  0x32   : > { %p724_p13 = pnand %p723_p12, %p717_p10 }
  0x34   : > { %727 = shalt.err (!%p724_p13)
}
  0x35   : > { %634 = dma.hbm_to_vmem [thread:$0]  (!%p1016_p7), %s1028_s10, 128, %s1031_s12, %s1033_s13  }
  0x36   : > { %s1064_s14 = sadd.s32 4294967295, %s925_s23   ;;  %s584_s17 = sadd.s32 4294967294, %s925_s23  }
  0x37   : > { %p83_p1 = scmp.ne.s32.totalorder %s909_s19, %s905_s18  ;;  %p1297_p3 = scmp.eq.s32.totalorder %s1064_s14, 0 }
  0x38   : > { %p193_p11 = scmp.eq.s32.totalorder %s1064_s14, 1  ;;  %p199_p0 = scmp.eq.s32.totalorder %s584_s17, 1 }
  0x39   : > { %p585_p2 = scmp.ge.s32.totalorder %s925_s23, 1  ;;  %p1074_p4 = por %p1297_p3, %p83_p1 }
  0x3a   : > { %p1317_p5 = scmp.ne.s32.totalorder %s913_s20, %s909_s19  ;;  %p1085_p8 = por %p199_p0, %p83_p1 }
  0x3b   : > { %s1316_s25 = scalar_select %p1074_p4, 1, 0 }
  0x3c   : > { %p1081_p6 = por %p193_p11, %p1317_p5  ;;  %p206_p10 = scmp.lt.s32.totalorder %s925_s23, 3 }
  0x3d   : > { %s1319_s12 = scalar_select %p1085_p8, 1, 0 }
  0x3e   : > { %s1318_s10 = scalar_select %p1081_p6, 1, 0 }
  0x3f   : > { %1320 = sst [smem:[#allocation24_spill]] %s1319_s12  ;;  %p1090_p12 = pnand %p585_p2, %p206_p10 }
  0x40   : > { %s1322_s1 = sld [smem:[#allocation25_spill]]  ;;  %s232_s11 = scalar_lea.vmem [#allocation6], %s1011_s28 }
  0x41   : > { %s1321_s26 = scalar_select %p1090_p12, 1, 0 }
  0x42   : > { %p624_p13 = pneg %p1090_p12  ;;  %s240_s16 = sshll.u32 %s232_s11, 4  ;;  %s1103_s16 = int_to_ptr.vmem [resolvable:$true] %s240_s16 }
  0x43   : > { %s1115_s7 = scalar_lea.hbm %s1287_s3, %s1014_s29  ;;  %s229_s24 = scalar_lea.sflag [#allocation3], %s1008_s27 }
  0x44   : > { %p1107_p1 = pnand %p624_p13, %p1297_p3 }
  0x46   : > { %s1098_s9 = scalar_lea.hbm %s1322_s1, %s1014_s29  ;;  %s733_s20 = scalar_lea.hbm %s1322_s1, 256 }
  0x47   : > { %s1323_s17 = scalar_select %p1107_p1, 1, 0 }
  0x48   : > { %s728_s22 = scalar_lea.hbm %s1098_s9, 128  ;;  %p734_p5 = scmp.lt.u32.totalorder %s1098_s9, %s1322_s1 }
  0x49   : > { %p729_p11 = scmp.ne.s32.totalorder %s1098_s9, %s728_s22  ;;  %p735_p10 = scmp.lt.u32.totalorder %s733_s20, %s728_s22 }
  0x4a   : > { %p737_p3 = scmp.lt.u32.totalorder %s728_s22, %s1098_s9 }
  0x4b   : > { %p731_p0 = pnand %p729_p11, %p1039_p9  ;;  %p736_p13 = por %p735_p10, %p734_p5 }
  0x4d   : > { %p732_p2 = pneg %p731_p0  ;;  %p738_p8 = por %p737_p3, %p736_p13 }
  0x4f   : > { %p739_p6 = pnand %p738_p8, %p732_p2 }
  0x51   : > { %742 = shalt.err (!%p739_p6)
}
  0x52   : > { %s743_s2 = scalar_lea.vmem %s1103_s16, 128  ;;  %s928_s6 = smov [#allocation6]  }
  0x53   : > { %p744_p11 = scmp.ne.s32.totalorder %s1103_s16, %s743_s2  ;;  %s748_s8 = sshll.u32 %s928_s6, 4  ;;  %s749_s8 = int_to_ptr.vmem [resolvable:$false] %s748_s8 }
  0x54   : > { %s750_s23 = scalar_lea.vmem %s749_s8, 256  ;;  %p751_p12 = scmp.lt.s32.totalorder %s1103_s16, %s749_s8 }
  0x55   : > { %p746_p0 = pnand %p744_p11, %p1039_p9  ;;  %p752_p1 = scmp.lt.s32.totalorder %s750_s23, %s743_s2 }
  0x57   : > { %p747_p4 = pneg %p746_p0  ;;  %p753_p5 = por %p752_p1, %p751_p12 }
  0x59   : > { %p754_p10 = pnand %p753_p5, %p747_p4 }
  0x5b   : > { %757 = shalt.err (!%p754_p10)
}
  0x5c   : > { %631 = dma.hbm_to_vmem [thread:$0]  (!%p1016_p7), %s1098_s9, 128, %s1103_s16, %s229_s24  }
  0x5d   : > { %s270_s20 = scalar_lea.vmem [#allocation9], %s1011_s28  ;;  %s758_s6 = scalar_lea.hbm %s1284_s0, 16 }
  0x5e   : > { %s278_s22 = sshll.u32 %s270_s20, 4  ;;  %p759_p3 = scmp.ne.s32.totalorder %s1284_s0, %s758_s6  ;;  %s279_s22 = int_to_ptr.vmem [resolvable:$true] %s278_s22 }
  0x5f   : > { %p1324_p6 = scmp.ne.s32.totalorder %s1323_s17, 0  ;;  %p765_p1 = scmp.lt.u32.totalorder %s758_s6, %s1284_s0 }
  0x61   : > { %p760_p4 = pneg %p1324_p6 }
  0x63   : > { %p761_p8 = pnand %p760_p4, %p759_p3 }
  0x65   : > { %p762_p12 = pneg %p761_p8 }
  0x67   : > { %p767_p2 = pnand %p765_p1, %p762_p12 }
  0x69   : > { %770 = shalt.err (!%p767_p2)
}
  0x6a   : > { %s929_s24 = smov [#allocation2]   ;;  %s771_s1 = scalar_lea.hbm %s1115_s7, 128 }
  0x6b   : > { %627 = dma.hbm_to_smem (!%p1324_p6), %s1284_s0, 16, %s929_s24, [#allocation5]  }
  0x6c   : > { %p772_p13 = scmp.ne.s32.totalorder %s1115_s7, %s771_s1  ;;  %s776_s20 = scalar_lea.hbm %s1287_s3, 256 }
  0x6d   : > { %p777_p5 = scmp.lt.u32.totalorder %s1115_s7, %s1287_s3  ;;  %p778_p10 = scmp.lt.u32.totalorder %s776_s20, %s771_s1 }
  0x6e   : > { %p774_p11 = pnand %p772_p13, %p1039_p9  ;;  %p780_p4 = scmp.lt.u32.totalorder %s771_s1, %s1115_s7 }
  0x6f   : > { %p779_p3 = por %p778_p10, %p777_p5 }
  0x70   : > { %p775_p0 = pneg %p774_p11 }
  0x71   : > { %p781_p8 = por %p780_p4, %p779_p3 }
  0x73   : > { %p782_p12 = pnand %p781_p8, %p775_p0 }
  0x75   : > { %785 = shalt.err (!%p782_p12)
}
  0x76   : > { %s786_s11 = scalar_lea.vmem %s279_s22, 128  ;;  %s930_s6 = smov [#allocation9]  }
  0x77   : > { %p787_p6 = scmp.ne.s32.totalorder %s279_s22, %s786_s11  ;;  %s791_s2 = sshll.u32 %s930_s6, 4  ;;  %s792_s2 = int_to_ptr.vmem [resolvable:$false] %s791_s2 }
  0x78   : > { %s793_s8 = scalar_lea.vmem %s792_s2, 256  ;;  %p794_p13 = scmp.lt.s32.totalorder %s279_s22, %s792_s2 }
  0x79   : > { %p789_p1 = pnand %p787_p6, %p1039_p9  ;;  %p795_p11 = scmp.lt.s32.totalorder %s793_s8, %s786_s11 }
  0x7b   : > { %p790_p2 = pneg %p789_p1  ;;  %p796_p7 = por %p795_p11, %p794_p13 }
  0x7d   : > { %p797_p5 = pnand %p796_p7, %p790_p2 }
  0x7f   : > { %800 = shalt.err (!%p797_p5)
}
  0x80   : > { %p1325_p10 = scmp.ne.s32.totalorder %s1312_s30, 0  ;;  %s1178_s16 = scalar_lea.hbm %s1288_s4, %s1014_s29 }
  0x81   : > { %s289_s1 = scalar_lea.vmem [#allocation10], %s1011_s28  ;;  %s286_s23 = scalar_lea.sflag [#allocation11], %s1008_s27 }
  0x82   : > { %637 = dma.hbm_to_vmem [thread:$0]  (!%p1325_p10), %s1115_s7, 128, %s279_s22, %s1033_s13  }
  0x83   : > { %s297_s18 = sshll.u32 %s289_s1, 4  ;;  %s801_s20 = scalar_lea.hbm %s1178_s16, 128  ;;  %s298_s18 = int_to_ptr.vmem [resolvable:$true] %s297_s18 }
  0x84   : > { %p802_p7 = scmp.ne.s32.totalorder %s1178_s16, %s801_s20  ;;  %s806_s7 = scalar_lea.hbm %s1288_s4, 256 }
  0x85   : > { %p807_p4 = scmp.lt.u32.totalorder %s1178_s16, %s1288_s4  ;;  %p808_p8 = scmp.lt.u32.totalorder %s806_s7, %s801_s20 }
  0x86   : > { %p804_p0 = pnand %p802_p7, %p1039_p9  ;;  %p810_p6 = scmp.lt.u32.totalorder %s801_s20, %s1178_s16 }
  0x87   : > { %p809_p12 = por %p808_p8, %p807_p4 }
  0x88   : > { %p805_p3 = pneg %p804_p0 }
  0x89   : > { %p811_p1 = por %p810_p6, %p809_p12 }
  0x8b   : > { %p812_p2 = pnand %p811_p1, %p805_p3 }
  0x8d   : > { %815 = shalt.err (!%p812_p2)
}
  0x8e   : > { %s816_s27 = scalar_lea.vmem %s298_s18, 128  ;;  %s931_s28 = smov [#allocation10]  }
  0x8f   : > { %p817_p13 = scmp.ne.s32.totalorder %s298_s18, %s816_s27  ;;  %s821_s12 = sshll.u32 %s931_s28, 4  ;;  %s822_s12 = int_to_ptr.vmem [resolvable:$false] %s821_s12 }
  0x90   : > { %s823_s11 = scalar_lea.vmem %s822_s12, 256  ;;  %p824_p7 = scmp.lt.s32.totalorder %s298_s18, %s822_s12 }
  0x91   : > { %p819_p11 = pnand %p817_p13, %p1039_p9  ;;  %p825_p0 = scmp.lt.s32.totalorder %s823_s11, %s816_s27 }
  0x93   : > { %p820_p5 = pneg %p819_p11  ;;  %p826_p10 = por %p825_p0, %p824_p7 }
  0x95   : > { %p827_p4 = pnand %p826_p10, %p820_p5 }
  0x97   : > { %830 = shalt.err (!%p827_p4)
}
  0x98   : > { %p1326_p8 = scmp.ne.s32.totalorder %s1312_s30, 0  ;;  %p1327_p3 = scmp.ne.s32.totalorder %s1321_s26, 0 }
  0x99   : > { %p1328_p12 = scmp.eq.s32.totalorder (!%p1327_p3), %s1064_s14, 0 }
  0x9a   : > { %640 = dma.hbm_to_vmem [thread:$0]  (!%p1326_p8), %s1178_s16, 128, %s298_s18, %s286_s23  }
  0x9b   : > { %306 = sbr.rel (%p1327_p3) target bundleno = 204 (0xcc), region = 40 }
  0xa2   : > { %884 = dma.done.wait (%p1328_p12), [#allocation5], 16   ;;  %p1329_p9 = pmov %p1328_p12 }
  0xa3   : > { %s1206_s15 = sand.u32 1, %s909_s19   ;;  %p1330_p10 = scmp.ne.s32.totalorder %s1316_s25, 0 }
  0xa4   : > { %886 = vsyncadd (%p1329_p9), [#allocation5], 4294967280  ;;  %s1209_s6 = sshll.u32 %s1206_s15, 3  ;;  %s313_s30 = scalar_lea.sflag [#allocation3], %s1206_s15 }
  0xa5   : > { %s316_s2 = scalar_lea.vmem [#allocation6], %s1209_s6 }
  0xa6   : > { %888 = dma.done.wait (%p1330_p10), %s313_s30, 128  }
  0xa7   : > { %890 = vsyncadd (%p1330_p10), %s313_s30, 4294967168  ;;  %s321_s26 = sand.u32 1, %s1064_s14   ;;  %s325_s24 = scalar_lea.vmem [#allocation7], %s1209_s6 }
  0xa8   : > { %s322_s8 = scalar_lea.sflag [#allocation8], %s321_s26 }
  0xa9   : > { %892 = dma.done.wait (%p1330_p10), %s322_s8, 256  }
  0xaa   : > { %894 = vsyncadd (%p1330_p10), %s322_s8, 4294967040  ;;  %s334_s9 = scalar_lea.vmem [#allocation9], %s1209_s6  ;;  %s340_s16 = scalar_lea.sflag [#allocation11], %s1206_s15 }
  0xab   : > { %s343_s1 = scalar_lea.vmem [#allocation10], %s1209_s6 }
  0xac   : > { %896 = dma.done.wait (%p1330_p10), %s340_s16, 128  }
  0xad   : > { %898 = vsyncadd (%p1330_p10), %s340_s16, 4294967168 }
  0xae   : > { %348 = sfence }
  0xaf   : > { %s386_s14 = sld [smem:[#allocation2]]  ;;  %s603_s18 = sld [smem:[#allocation2 + $0x1]]  ;;  %v387_v0 = vld [vmem:[%s316_s2] sm:$0xff]  ;;  %v391_v1 = vld [vmem:[%s325_s24] sm:$0xff]  ;;  %vm405_vm0 = vcmask 523264  }
  0xb0   : > { %s604_s23 = sld [smem:[#allocation2 + $0x2]]  ;;  %s605_s20 = sld [smem:[#allocation2 + $0x3]]  ;;  %v396_v2 = vld [vmem:[%s334_s9] sm:$0xff]  ;;  %v401_v7 = vld [vmem:[%s343_s1] sm:$0xff] }
  0xb1   : > { %s385_s25 = scalar_lea.vmem [#allocation12], %s1209_s6  ;;  %s607_s13 = sshll.u32 %s917_s21, 7 }
  0xb2   : > { %s422_s17 = sshll.u32 %s385_s25, 4  ;;  %s1237_s29 = scalar_lea.hbm %s1289_s5, %s607_s13  ;;  %s1232_s17 = int_to_ptr.vmem [resolvable:$true] %s422_s17 }
  0xb3   : > { %s408_s27 = scalar_lea.sflag [#allocation4], %s1206_s15  ;;  %s831_s28 = scalar_lea.vmem %s1232_s17, 128 }
  0xb4   : > { %p832_p6 = scmp.ne.s32.totalorder %s1232_s17, %s831_s28  ;;  %p1331_p1 = scmp.ne.s32.totalorder %s1318_s10, 0 }
  0xb5   : > { %v388_v3 = vstv %s386_s14  ;;  %v392_v5 = vstv %s603_s18  ;;  %s932_s21 = smov [#allocation12]  }
  0xb6   : > { %v389_v4 = vmul.f32 %v388_v3, %v387_v0  ;;  %v397_v6 = vstv %s604_s23  ;;  %v393_v8 = vmul.f32 %v392_v5, %v391_v1  ;;  %v402_v10 = vstv %s605_s20  ;;  %p833_p2 = pnand %p832_p6, %p1331_p1  ;;  %s835_s12 = sshll.u32 %s932_s21, 4  ;;  %s836_s12 = int_to_ptr.vmem [resolvable:$false] %s835_s12 }
  0xb7   : > { %v398_v9 = vmul.f32 %v397_v6, %v396_v2  ;;  %v403_v12 = vmul.f32 %v402_v10, %v401_v7  ;;  %s837_s11 = scalar_lea.vmem %s836_s12, 256  ;;  %p838_p11 = scmp.lt.s32.totalorder %s1232_s17, %s836_s12 }
  0xb8   : > { %v394_v11 = vadd.f32 %v393_v8, %v389_v4  ;;  %p834_p13 = pneg %p833_p2  ;;  %p839_p5 = scmp.lt.s32.totalorder %s837_s11, %s831_s28 }
  0xba   : > { %v399_v13 = vadd.f32 %v398_v9, %v394_v11  ;;  %p840_p7 = por %p839_p5, %p838_p11 }
  0xbc   : > { %v404_v14 = vadd.f32 %v403_v12, %v399_v13  ;;  %p841_p0 = pnand %p840_p7, %p834_p13 }
  0xbe   : > { %406 = vst.msk [vmem:[%s385_s25] sm:$0xff] %vm405_vm0, %v404_v14 }
  0xbf   : > { %844 = shalt.err (!%p841_p0)
}
  0xc0   : > { %s845_s15 = scalar_lea.hbm %s1237_s29, 128  ;;  %s849_s2 = scalar_lea.hbm %s1289_s5, 256 }
  0xc1   : > { %p846_p4 = scmp.ne.s32.totalorder %s1237_s29, %s845_s15  ;;  %p850_p12 = scmp.lt.u32.totalorder %s1237_s29, %s1289_s5 }
  0xc2   : > { %p851_p9 = scmp.lt.u32.totalorder %s849_s2, %s845_s15  ;;  %p853_p6 = scmp.lt.u32.totalorder %s845_s15, %s1237_s29 }
  0xc3   : > { %p847_p8 = pnand %p846_p4, %p1331_p1 }
  0xc4   : > { %p852_p10 = por %p851_p9, %p850_p12 }
  0xc5   : > { %p848_p3 = pneg %p847_p8 }
  0xc6   : > { %p854_p2 = por %p853_p6, %p852_p10 }
  0xc8   : > { %p855_p13 = pnand %p854_p2, %p848_p3 }
  0xca   : > { %858 = shalt.err (!%p855_p13)
}
  0xcb   : > { %622 = dma.vmem_to_hbm [thread:$0]  (%p1331_p1), %s1232_s17, 128, %s1237_s29, %s408_s27  }
  0xcc PF: > { %s1332_s24 = sld [smem:[#allocation18_spill]]  ;;  %s1333_s9 = sld [smem:[#allocation24_spill]] }
  0xcd   : > { %s1334_s16 = sld [smem:[#allocation21_spill]] }
  0xd2   : > { %s434_s1 = sand.u32 1, %s1332_s24   ;;  %p1335_p11 = scmp.ne.s32.totalorder %s1333_s9, 0 }
  0xd3   : > { %p1336_p5 = scmp.ge.s32.totalorder %s1334_s16, 2  ;;  %s435_s14 = scalar_lea.sflag [#allocation4], %s434_s1 }
  0xd5   : > { %p642_p7 = pnand %p1336_p5, %p1335_p11 }
  0xd7   : > { %900 = dma.done.wait (!%p642_p7), %s435_s14, 128  }
  0xd8   : > { %902 = vsyncadd (!%p642_p7), %s435_s14, 4294967168  ;;  %s28_s23 = sadd.s32 1, %s1334_s16   ;;  %s1337_s20 = sld [smem:[#allocation19_spill]] }
  0xd9   : > { %p25_p0 = scmp.ge.s32.totalorder %s28_s23, 4   ;;  %s1338_s10 = sld [smem:[#allocation23_spill]] }
  0xda   : > { %s1339_s21 = sld [smem:[#allocation20_spill]]  ;;  %s1340_s22 = sld [smem:[#allocation22_spill]] }
  0xdb   : > { %s1341_s18 = smov %s909_s19  ;;  %27 = sbr.rel (!%p25_p0) target bundleno = 14 (0xe), region = 127 }
  0xde   : > { %s1342_s19 = smov %s1337_s20 }
  0xdf   : > { %s1343_s20 = smov %s1338_s10 }
  0xe2   :  { %440 = vsyncpa [#allocation3], 1 }
  0xe3   :  { %442 = vsyncpa [#allocation3 + $0x1], 1 }
  0xe4   :  { %443 = vsyncpa [#allocation8], 1 }
  0xe5   :  { %445 = vsyncpa [#allocation8 + $0x1], 1 }
  0xe6   :  { %446 = vsyncpa [#allocation11], 1 }
  0xe7   :  { %448 = vsyncpa [#allocation11 + $0x1], 1 }
  0xe8   :  { %449 = vsyncpa [#allocation4], 1 }
  0xe9   :  { %451 = vsyncpa [#allocation4 + $0x1], 1 }
  0xea   :  { %452 = vsyncpa [#allocation5], 1 }
  0xeb   :  { %454 = vsyncpa [#allocation5 + $0x1], 1 }

</bundles_post_ra>
